<compile_context>
chip_gen: v7x
topology: tpu7x:2x2x1
jax: 0.10.0
libtpu: 0.0.40
codegen_flags: <defaults>
</compile_context>

<pallas_src>
import jax
import jax.numpy as jnp
from jax.experimental import pallas as pl
from jax.experimental.pallas import tpu as pltpu


def fused_affine_permute_kernel(x_ref, wt_ref, b_ref, o_ref):
    """One grid step: out[b, :, s_tile] = W_eff^T @ x[b, s_tile, :]^T + b_eff.

    x_ref : (1, ts, F_in)   activation tile (natural input layout)
    wt_ref: (F_out, F_in)   W_eff transposed, VMEM-resident across the grid
    b_ref : (F_out, 1)      b_eff as a column, VMEM-resident
    o_ref : (1, F_out, ts)  output tile already in permuted (B, F, S) layout
    """
    x = x_ref[0]            # (ts, F_in)
    wt = wt_ref[...]        # (F_out, F_in)
    # Contract over F_in; result (F_out, ts) -> permute(0,2,1) is fused into the
    # store and the store is lane-dense along the seq axis.
    y = jnp.einsum("ok,sk->os", wt, x, preferred_element_type=jnp.float32)
    o_ref[0] = (y + b_ref[...]).astype(o_ref.dtype)


def _pick_seq_tile(S):
    # Largest lane-friendly tile that divides S; fall back to full extent for
    # tiny S (block equal to full array dim satisfies the (8,128) rule).
    for cand in (512, 256, 128):
        if S % cand == 0:
            return cand
    return S


def init_params(key, feat=2):
    # Deterministic init mimicking torch.nn.Linear(2, 2): U(-1/sqrt(in), 1/sqrt(in)).
    bound = 1.0 / jnp.sqrt(jnp.float32(feat))
    keys = jax.random.split(key, 6)
    w0 = jax.random.uniform(keys[0], (feat, feat), jnp.float32, -bound, bound)
    b0 = jax.random.uniform(keys[1], (feat,), jnp.float32, -bound, bound)
    w1 = jax.random.uniform(keys[2], (feat, feat), jnp.float32, -bound, bound)
    b1 = jax.random.uniform(keys[3], (feat,), jnp.float32, -bound, bound)
    w2 = jax.random.uniform(keys[4], (feat, feat), jnp.float32, -bound, bound)
    b2 = jax.random.uniform(keys[5], (feat,), jnp.float32, -bound, bound)
    return (w0, b0, w1, b1, w2, b2)


@jax.jit
def model_forward(x, params):
    B, S, F = x.shape
    w0, b0, w1, b1, w2, b2 = params

    # Exact algebraic collapse of the affine chain (no nonlinearity between layers):
    #   v2 = x @ (W0^T W1^T W1^T W2^T) + (((b0 W1^T + b1) W1^T + b1) W2^T + b2)
    w_eff = w0.T @ w1.T @ w1.T @ w2.T                       # (F_in, F_out)
    b_eff = ((b0 @ w1.T + b1) @ w1.T + b1) @ w2.T + b2       # (F_out,)
    wt = w_eff.T                                             # (F_out, F_in)
    b_col = b_eff.reshape(F, 1)                              # (F_out, 1)

    ts = _pick_seq_tile(S)
    grid = (B, S // ts)

    out = pl.pallas_call(
        fused_affine_permute_kernel,
        out_shape=jax.ShapeDtypeStruct((B, F, S), x.dtype),
        grid_spec=pltpu.PrefetchScalarGridSpec(
            num_scalar_prefetch=0,
            grid=grid,
            in_specs=[
                # Activation: tile over (batch, seq), full F extent (F=2 < 128,
                # allowed because it equals the full array dim).
                pl.BlockSpec((1, ts, F), lambda b, i: (b, i, 0)),
                # Collapsed weight / bias: constant index_map -> VMEM-resident.
                pl.BlockSpec((F, F), lambda b, i: (0, 0)),
                pl.BlockSpec((F, 1), lambda b, i: (0, 0)),
            ],
            # Output written directly in permuted (B, F, S) layout, seq on lanes.
            out_specs=pl.BlockSpec((1, F, ts), lambda b, i: (b, 0, i)),
        ),
        compiler_params=pltpu.CompilerParams(
            dimension_semantics=("parallel", "parallel"),
        ),
    )(x, wt, b_col)
    return out


def reference_forward(x, params):
    w0, b0, w1, b1, w2, b2 = params
    t1 = x @ w0.T + b0
    t2 = t1 @ w1.T + b1
    v3 = t2 @ w1.T + b1
    v2 = v3 @ w2.T + b2
    return jnp.transpose(v2, (0, 2, 1))


if __name__ == "__main__":
    key = jax.random.PRNGKey(0)
    k_x, k_p = jax.random.split(key)
    B, S, F = 2, 1024, 2          # small, lane-friendly seq; grid = (2, 2)
    x = jax.random.normal(k_x, (B, S, F), jnp.float32)
    params = init_params(k_p, feat=F)

    out = model_forward(x, params)
    jax.block_until_ready(out)

    ref = reference_forward(x, params)
    assert out.shape == (B, F, S), out.shape
    assert jnp.allclose(out, ref, atol=1e-4, rtol=1e-4), "mismatch vs JAX reference"
    print("KERNEL_OK")
</pallas_src>

<mosaic_0001>
module attributes {stable_mosaic.version = 11 : i64} {
  func.func @fused_affine_permute_kernel(%arg0: i32, %arg1: i32, %arg2: memref<1x512x2xf32, #tpu.memory_space<vmem>>, %arg3: memref<2x2xf32, #tpu.memory_space<vmem>>, %arg4: memref<2x1xf32, #tpu.memory_space<vmem>>, %arg5: memref<1x2x512xf32, #tpu.memory_space<vmem>>) attributes {dimension_semantics = [#tpu.dimension_semantics<parallel>, #tpu.dimension_semantics<parallel>], iteration_bounds = array<i64: 2, 2>, scalar_prefetch = 0 : i64, scratch_operands = 0 : i64, tpu.core_type = #tpu.core_type<tc>, window_params = [{transform_indices = @transform_0, window_bounds = array<i64: 1, 512, 2>}, {pipeline_mode = #tpu.pipeline_mode<synchronous>, transform_indices = @transform_1, window_bounds = array<i64: 2, 2>}, {pipeline_mode = #tpu.pipeline_mode<synchronous>, transform_indices = @transform_2, window_bounds = array<i64: 2, 1>}, {transform_indices = @transform_3, window_bounds = array<i64: 1, 2, 512>}]} {
    %c0 = arith.constant 0 : index
    %c0_0 = arith.constant 0 : index
    %c0_1 = arith.constant 0 : index
    %0 = vector.load %arg2[%c0, %c0_0, %c0_1] : memref<1x512x2xf32, #tpu.memory_space<vmem>>, vector<1x512x2xf32>
    %1 = vector.shape_cast %0 : vector<1x512x2xf32> to vector<512x2xf32>
    %c0_2 = arith.constant 0 : index
    %c0_3 = arith.constant 0 : index
    %2 = vector.load %arg3[%c0_2, %c0_3] : memref<2x2xf32, #tpu.memory_space<vmem>>, vector<2x2xf32>
    "tpu.trace_start"() <{level = 10 : i32, message = "ok,sk->os"}> : () -> ()
    %cst = arith.constant dense<0.000000e+00> : vector<2x512xf32>
    %3 = tpu.matmul %2, %1, %cst {dimension_numbers = #tpu.dot_dimension_numbers<[1], [1], [0], [0], [0, 0, 1, 0], [], []>} : vector<2x2xf32>, vector<512x2xf32>, vector<2x512xf32> -> vector<2x512xf32>
    "tpu.trace_stop"() : () -> ()
    %c0_4 = arith.constant 0 : index
    %c0_5 = arith.constant 0 : index
    %4 = vector.load %arg4[%c0_4, %c0_5] : memref<2x1xf32, #tpu.memory_space<vmem>>, vector<2x1xf32>
    %5 = vector.broadcast %4 : vector<2x1xf32> to vector<2x512xf32>
    %6 = arith.addf %3, %5 : vector<2x512xf32>
    %c0_6 = arith.constant 0 : index
    %c0_7 = arith.constant 0 : index
    %c0_8 = arith.constant 0 : index
    %7 = vector.load %arg5[%c0_6, %c0_7, %c0_8] : memref<1x2x512xf32, #tpu.memory_space<vmem>>, vector<1x2x512xf32>
    %8 = vector.shape_cast %7 : vector<1x2x512xf32> to vector<2x512xf32>
    %9 = vector.shape_cast %6 : vector<2x512xf32> to vector<1x2x512xf32>
    tpu.vector_store %arg5[%c0_6, %c0_7, %c0_8], %9 {strides = array<i32>} : memref<1x2x512xf32, #tpu.memory_space<vmem>>, vector<1x2x512xf32>,
    return
  }
  func.func @transform_0(%arg0: i32, %arg1: i32) -> (i32, i32, i32) {
    %c0_i32 = arith.constant 0 : i32
    %c0_i32_0 = arith.constant 0 : i32
    return %arg0, %arg1, %c0_i32 : i32, i32, i32
  }
  func.func @transform_1(%arg0: i32, %arg1: i32) -> (i32, i32) {
    %c0_i32 = arith.constant 0 : i32
    %c0_i32_0 = arith.constant 0 : i32
    %c0_i32_1 = arith.constant 0 : i32
    return %c0_i32, %c0_i32_0 : i32, i32
  }
  func.func @transform_2(%arg0: i32, %arg1: i32) -> (i32, i32) {
    %c0_i32 = arith.constant 0 : i32
    %c0_i32_0 = arith.constant 0 : i32
    %c0_i32_1 = arith.constant 0 : i32
    return %c0_i32, %c0_i32_0 : i32, i32
  }
  func.func @transform_3(%arg0: i32, %arg1: i32) -> (i32, i32, i32) {
    %c0_i32 = arith.constant 0 : i32
    %c0_i32_0 = arith.constant 0 : i32
    return %arg0, %c0_i32, %arg1 : i32, i32, i32
  }
}

</mosaic_0001>

<bundles_post_ra>
// kernel: model_forward.1
= control target key start
LH: loop header
LB: loop body
LE: loop exit
PB: predicated region body
PF: predicated region fallthrough
CT: control target
= control target key end

     0   :  { %8 = vsyncpa [#allocation3], 0  ;;  %s1454_s0 = inlined_call_operand.vmem [shape: f32[2,1024,2], index: 0, kind: input, shape index: {}]   ;;  %s1455_s1 = inlined_call_operand.vmem [shape: f32[2,2], index: 1, kind: input, shape index: {}]   ;;  %s1456_s2 = inlined_call_operand.vmem [shape: f32[2,1], index: 2, kind: input, shape index: {}]   ;;  %s1457_s3 = inlined_call_operand.hbm [shape: f32[2,2,1024], index: 3, kind: output, shape index: {}]  }
   0x1   :  { %10 = vsyncpa [#allocation3 + $0x1], 0  ;;  %s1166_s12 = smov 0   ;;  %s1168_s13 = smov 0  }
   0x2   :  { %s1170_s14 = smov 0   ;;  %s1172_s15 = smov 0  }
   0x3   :  { %s1174_s16 = smov 0   ;;  %s1176_s17 = smov 0  }
   0x4   :  { %s1178_s18 = smov 0   ;;  %s1180_s19 = smov 0  }
   0x5 LB: > { %s728_s20 = sadd.s32 4294967295, %s1141_s19   ;;  %s729_s21 = sadd.s32 4294967294, %s1141_s19   ;;  %s1141_s19 = sphi %s1180_s19, %s16_s19   ;;  %s1137_s18 = sphi %s1178_s18, %s1468_s18   ;;  %s1133_s17 = sphi %s1176_s17, %s1467_s17   ;;  %s1129_s16 = sphi %s1174_s16, %s1466_s16   ;;  %s1125_s15 = sphi %s1172_s15, %s1465_s15   ;;  %s1121_s14 = sphi %s1170_s14, %s1464_s14   ;;  %s1117_s13 = sphi %s1168_s13, %s1463_s13   ;;  %s1113_s12 = sphi %s1166_s12, %s1462_s12  }
   0x6   : > { %s25_s22 = sadd.s32 1, %s1133_s17  ;;  %s28_s23 = sadd.s32 1, %s1137_s18 }
   0x7   : > { %p26_p0 = scmp.ge.s32.totalorder %s25_s22, 2  ;;  %p117_p1 = scmp.ne.s32.totalorder %s1121_s14, %s1117_s13 }
   0x8   : > { %p118_p2 = scmp.eq.s32.totalorder %s728_s20, 3  ;;  %p123_p5 = scmp.ne.s32.totalorder %s1117_s13, %s1113_s12 }
   0x9   : > { %s1470_s22 = smov (%p26_p0, %s25_s22), 0  ;;  %s1472_s23 = smov (!%p26_p0, %s28_s23), %s1137_s18 }
   0xa   : > { %s103_s24 = ssub.s32 %s1133_s17, %s1470_s22  ;;  %p1217_p3 = por %p118_p2, %p117_p1 }
   0xb   : > { %p30_p4 = scmp.ge.s32.totalorder %s1472_s23, 2  ;;  %p124_p6 = scmp.eq.s32.totalorder %s729_s21, 3 }
   0xc   : > { %p732_p7 = scmp.ge.s32.totalorder %s1141_s19, 1  ;;  %p161_p9 = scmp.lt.s32.totalorder %s1141_s19, 5 }
   0xd   : > { %s1474_s23 = smov (%p30_p4, %s1472_s23), 0  ;;  %p1226_p8 = por %p124_p6, %p123_p5 }
   0xe   : > { %s102_s27 = ssub.s32 %s1137_s18, %s1474_s23  ;;  %s107_s28 = sadd.s32 1, %s1121_s14 }
   0xf   : > { %s104_s29 = sor.u32 %s103_s24, %s102_s27  ;;  %p162_p10 = pnand %p732_p7, %p161_p9 }
  0x10   : > { %p105_p11 = scmp.eq.s32.totalorder %s104_s29, 0  ;;  %s734_s4 = sshll.u32 (!%p162_p10), %s1125_s15, 6  ;;  %vm271_vm0 = vcmask (!%p162_p10), 15360   ;;  %v1242_v0 = vld [vmem:[%s1455_s1] sm:$0x3] (!%p162_p10)  ;;  %v1143_v2 = vmov (!%p162_p10), 0  }
  0x11   : > { %165 = sbr.rel (%p162_p10) target bundleno = 334 (0x14e), region = 32  ;;  %p190_p12 = scmp.lt.s32.totalorder (!%p162_p10), %s1129_s16, 1  ;;  %841 = vmatprep.mubr.msk.f32.mxu0 (!%p162_p10), %vm271_vm0, %v1242_v0  ;;  %875 = vmatprep.mubr.msk.f32.mxu1 (!%p162_p10), %vm271_vm0, %v1242_v0  ;;  %v265_v1 = vld [vmem:[%s1456_s2] sm:$0x3] (!%p162_p10)  ;;  %vm1259_vm1 = vmpackc.low (!%p162_p10), %vm271_vm0, %vm271_vm0 }
  0x12   : > { %s1235_s30 = scalar_select %p105_p11, %s1121_s14, %s107_s28  }
  0x13   : > { %p192_p13 = scmp.lt.s32.totalorder (!%p162_p10), %s734_s4, 127  ;;  %1046 = vset.pattern.permute.xlu0 (!%p162_p10), %v1143_v2  ;;  %s186_s28 = sand.u32 (!%p162_p10), 1, %s1117_s13  }
  0x14   : > { %268 = vperm.xlu0 (!%p162_p10), %1046, %v265_v1   ;;  %s733_s29 = sshll.u32 (!%p162_p10), %s186_s28, 3  ;;  %s805_s5 = sshll.u32 (!%p162_p10), %s1129_s16, 3 }
  0x15   : > { %s188_s8 = scalar_lea.vmem (!%p162_p10), [#allocation2], %s733_s29  ;;  %s1145_s21 = smov (!%p162_p10), [#allocation2]  }
  0x16   : > { %s1051_s24 = sshll.u32 (!%p162_p10), %s1145_s21, 4  ;;  %s1052_s24 = int_to_ptr.vmem [resolvable:$false] %s1051_s24 }
  0x18   : > { %s191_s9 = scalar_select %p190_p12, %s1129_s16, 1 }
  0x19   : > { %s1476_s4 = smov (!%p192_p13, %s734_s4), 127 }
  0x1a   : > { %s735_s10 = sshll.u32 %s191_s9, 7  ;;  %s649_s9 = sshll.u32 %s188_s8, 4  ;;  %s1403_s9 = int_to_ptr.vmem [resolvable:$true] %s649_s9 }
  0x1b   : > { %s195_s11 = sadd.s32 %s735_s10, %s1476_s4  ;;  %s804_s4 = sshll.u32 %s1125_s15, 2 }
  0x1c   : > { %s736_s20 = sshll.u32 %s195_s11, 3  ;;  %s645_s6 = sadd.s32 %s805_s5, %s804_s4 }
  0x1d   : > { %s1255_s27 = scalar_lea.vmem %s1454_s0, %s736_s20  ;;  %s806_s7 = sshll.u32 %s645_s6, 5 }
  0x1e   : > { %v216_v4 = vld [vmem:[%s1255_s27 + $0x80] sm:$0xff]  ;;  %v217_v5 = vld [vmem:[%s1255_s27 + $0x88] sm:$0xff]  ;;  %v218_v15 = vld [vmem:[%s1255_s27 + $0x90] sm:$0xff]  ;;  %s1401_s10 = scalar_lea.hbm %s1457_s3, %s806_s7  ;;  %s633_s11 = scalar_lea.sflag [#allocation3], %s186_s28 }
  0x1f   : > { %v248_v6 = vld [vmem:[%s1255_s27 + $0x180] sm:$0xff]  ;;  %v877_v7 = vpack.c.bf16 %v217_v5, %v216_v4  ;;  %v249_v8 = vld [vmem:[%s1255_s27 + $0x188] sm:$0xff]  ;;  %v219_v17 = vld [vmem:[%s1255_s27 + $0x98] sm:$0xff]  ;;  %s1047_s20 = scalar_lea.vmem %s1403_s9, 128  ;;  %p1054_p4 = scmp.lt.s32.totalorder %s1403_s9, %s1052_s24 }
  0x20   : > { %v200_v9 = vld [vmem:[%s1255_s27] sm:$0xff]  ;;  %v201_v10 = vld [vmem:[%s1255_s27 + $0x8] sm:$0xff]  ;;  %v925_v11 = vpack.c.bf16 %v249_v8, %v248_v6  ;;  %v250_v18 = vld [vmem:[%s1255_s27 + $0x190] sm:$0xff]  ;;  %v883_v20 = vpack.c.bf16 %v219_v17, %v218_v15  ;;  %p1048_p0 = scmp.ne.s32.totalorder %s1403_s9, %s1047_s20 }
  0x21   : > { %v880_v12 = vpack.c.bf16 %v201_v10, %v200_v9  ;;  %v232_v13 = vld [vmem:[%s1255_s27 + $0x100] sm:$0xff]  ;;  %v233_v14 = vld [vmem:[%s1255_s27 + $0x108] sm:$0xff]  ;;  %879 = vmatprep.subr.msk.bf16.mxu0 %vm1259_vm1, %v877_v7  ;;  %v251_v19 = vld [vmem:[%s1255_s27 + $0x198] sm:$0xff] }
  0x22   : > { %v928_v16 = vpack.c.bf16 %v233_v14, %v232_v13  ;;  %927 = vmatprep.subr.msk.bf16.mxu1 %vm1259_vm1, %v925_v11  ;;  %v931_v21 = vpack.c.bf16 %v251_v19, %v250_v18  ;;  %v202_v22 = vld [vmem:[%s1255_s27 + $0x10] sm:$0xff]  ;;  %v203_v23 = vld [vmem:[%s1255_s27 + $0x18] sm:$0xff]  ;;  %v220_v26 = vld [vmem:[%s1255_s27 + $0xa0] sm:$0xff]  ;;  %p1049_p1 = pnand %p1048_p0, %p1217_p3 }
  0x23   : > { %882 = vmatpush3.bf16.xpose.msk.msra.mxu0 %vm1259_vm1, %v880_v12  ;;  %v234_v24 = vld [vmem:[%s1255_s27 + $0x110] sm:$0xff]  ;;  %v235_v25 = vld [vmem:[%s1255_s27 + $0x118] sm:$0xff]  ;;  %v221_v27 = vld [vmem:[%s1255_s27 + $0xa8] sm:$0xff]  ;;  %v886_v30 = vpack.c.bf16 %v203_v23, %v202_v22 }
  0x24   : > { %930 = vmatpush3.bf16.xpose.msk.msra.mxu1 %vm1259_vm1, %v928_v16  ;;  %885 = vmatprep.subr.msk.bf16.mxu0 %vm1259_vm1, %v883_v20  ;;  %v252_v28 = vld [vmem:[%s1255_s27 + $0x1a0] sm:$0xff]  ;;  %v253_v29 = vld [vmem:[%s1255_s27 + $0x1a8] sm:$0xff]  ;;  %v934_v31 = vpack.c.bf16 %v235_v25, %v234_v24  ;;  %v889_v32 = vpack.c.bf16 %v221_v27, %v220_v26  ;;  %v222_v38 = vld [vmem:[%s1255_s27 + $0xb0] sm:$0xff]  ;;  %p1050_p2 = pneg %p1049_p1 }
  0x25   : > { %933 = vmatprep.subr.msk.bf16.mxu1 %vm1259_vm1, %v931_v21  ;;  %v937_v33 = vpack.c.bf16 %v253_v29, %v252_v28  ;;  %v204_v34 = vld [vmem:[%s1255_s27 + $0x20] sm:$0xff]  ;;  %v205_v35 = vld [vmem:[%s1255_s27 + $0x28] sm:$0xff]  ;;  %v223_v39 = vld [vmem:[%s1255_s27 + $0xb8] sm:$0xff] }
  0x26   : > { %v236_v36 = vld [vmem:[%s1255_s27 + $0x120] sm:$0xff]  ;;  %v237_v37 = vld [vmem:[%s1255_s27 + $0x128] sm:$0xff]  ;;  %v254_v40 = vld [vmem:[%s1255_s27 + $0x1b0] sm:$0xff]  ;;  %v892_v42 = vpack.c.bf16 %v205_v35, %v204_v34  ;;  %v895_v44 = vpack.c.bf16 %v223_v39, %v222_v38  ;;  %v1144_v38 = vmov 1983009808  }
  0x27   : > { %v255_v41 = vld [vmem:[%s1255_s27 + $0x1b8] sm:$0xff]  ;;  %v940_v43 = vpack.c.bf16 %v237_v37, %v236_v36  ;;  %v206_v46 = vld [vmem:[%s1255_s27 + $0x30] sm:$0xff]  ;;  %v224_v50 = vld [vmem:[%s1255_s27 + $0xc0] sm:$0xff]  ;;  %v616_v39 = vunpack.c.l.s4 %v1144_v38 }
  0x28   : > { %v943_v45 = vpack.c.bf16 %v255_v41, %v254_v40  ;;  %v207_v47 = vld [vmem:[%s1255_s27 + $0x38] sm:$0xff]  ;;  %v238_v48 = vld [vmem:[%s1255_s27 + $0x130] sm:$0xff]  ;;  %v225_v51 = vld [vmem:[%s1255_s27 + $0xc8] sm:$0xff]  ;;  %v618_v40 = vlaneseq }
  0x29   : > { %v239_v49 = vld [vmem:[%s1255_s27 + $0x138] sm:$0xff]  ;;  %v256_v52 = vld [vmem:[%s1255_s27 + $0x1c0] sm:$0xff]  ;;  %v257_v53 = vld [vmem:[%s1255_s27 + $0x1c8] sm:$0xff]  ;;  %v898_v54 = vpack.c.bf16 %v207_v47, %v206_v46  ;;  %v901_v56 = vpack.c.bf16 %v225_v51, %v224_v50 }
  0x2a   : > { %v946_v55 = vpack.c.bf16 %v239_v49, %v238_v48  ;;  %v949_v57 = vpack.c.bf16 %v257_v53, %v256_v52  ;;  %v208_v58 = vld [vmem:[%s1255_s27 + $0x40] sm:$0xff]  ;;  %v209_v59 = vld [vmem:[%s1255_s27 + $0x48] sm:$0xff]  ;;  %v226_v62 = vld [vmem:[%s1255_s27 + $0xd0] sm:$0xff] }
  0x2b   : > { %888 = vmatpush3.bf16.xpose.msk.msra.mxu0 %vm1259_vm1, %v886_v30  ;;  %v240_v60 = vld [vmem:[%s1255_s27 + $0x140] sm:$0xff]  ;;  %v241_v61 = vld [vmem:[%s1255_s27 + $0x148] sm:$0xff]  ;;  %v227_v63 = vld [vmem:[%s1255_s27 + $0xd8] sm:$0xff]  ;;  %v904_v4 = vpack.c.bf16 %v209_v59, %v208_v58 }
  0x2c   : > { %936 = vmatpush3.bf16.xpose.msk.msra.mxu1 %vm1259_vm1, %v934_v31  ;;  %891 = vmatprep.subr.msk.bf16.mxu0 %vm1259_vm1, %v889_v32  ;;  %v258_v1 = vld [vmem:[%s1255_s27 + $0x1d0] sm:$0xff]  ;;  %v259_v2 = vld [vmem:[%s1255_s27 + $0x1d8] sm:$0xff]  ;;  %v952_v5 = vpack.c.bf16 %v241_v61, %v240_v60  ;;  %v907_v6 = vpack.c.bf16 %v227_v63, %v226_v62  ;;  %v228_v12 = vld [vmem:[%s1255_s27 + $0xe0] sm:$0xff] }
  0x2d   : > { %939 = vmatprep.subr.msk.bf16.mxu1 %vm1259_vm1, %v937_v33  ;;  %v955_v7 = vpack.c.bf16 %v259_v2, %v258_v1  ;;  %v210_v8 = vld [vmem:[%s1255_s27 + $0x50] sm:$0xff]  ;;  %v211_v9 = vld [vmem:[%s1255_s27 + $0x58] sm:$0xff]  ;;  %v229_v13 = vld [vmem:[%s1255_s27 + $0xe8] sm:$0xff] }
  0x2e   : > { %v242_v10 = vld [vmem:[%s1255_s27 + $0x150] sm:$0xff]  ;;  %v243_v11 = vld [vmem:[%s1255_s27 + $0x158] sm:$0xff]  ;;  %v260_v14 = vld [vmem:[%s1255_s27 + $0x1e0] sm:$0xff]  ;;  %v910_v16 = vpack.c.bf16 %v211_v9, %v210_v8  ;;  %v913_v18 = vpack.c.bf16 %v229_v13, %v228_v12 }
  0x2f   : > { %v261_v15 = vld [vmem:[%s1255_s27 + $0x1e8] sm:$0xff]  ;;  %v958_v17 = vpack.c.bf16 %v243_v11, %v242_v10  ;;  %v212_v20 = vld [vmem:[%s1255_s27 + $0x60] sm:$0xff]  ;;  %v230_v24 = vld [vmem:[%s1255_s27 + $0xf0] sm:$0xff] }
  0x30   : > { %v961_v19 = vpack.c.bf16 %v261_v15, %v260_v14  ;;  %v213_v21 = vld [vmem:[%s1255_s27 + $0x68] sm:$0xff]  ;;  %v244_v22 = vld [vmem:[%s1255_s27 + $0x160] sm:$0xff]  ;;  %v231_v25 = vld [vmem:[%s1255_s27 + $0xf8] sm:$0xff] }
  0x31   : > { %v245_v23 = vld [vmem:[%s1255_s27 + $0x168] sm:$0xff]  ;;  %v262_v26 = vld [vmem:[%s1255_s27 + $0x1f0] sm:$0xff]  ;;  %v263_v27 = vld [vmem:[%s1255_s27 + $0x1f8] sm:$0xff]  ;;  %v916_v28 = vpack.c.bf16 %v213_v21, %v212_v20  ;;  %v919_v30 = vpack.c.bf16 %v231_v25, %v230_v24 }
  0x32   : > { %v964_v29 = vpack.c.bf16 %v245_v23, %v244_v22  ;;  %v967_v31 = vpack.c.bf16 %v263_v27, %v262_v26  ;;  %v214_v32 = vld [vmem:[%s1255_s27 + $0x70] sm:$0xff]  ;;  %v215_v33 = vld [vmem:[%s1255_s27 + $0x78] sm:$0xff] }
  0x33   : > { %894 = vmatpush3.bf16.xpose.msk.msra.mxu0 %vm1259_vm1, %v892_v42  ;;  %v246_v34 = vld [vmem:[%s1255_s27 + $0x170] sm:$0xff]  ;;  %v247_v35 = vld [vmem:[%s1255_s27 + $0x178] sm:$0xff]  ;;  %v922_v36 = vpack.c.bf16 %v215_v33, %v214_v32  ;;  %v617_v42 = vunpack.c.0.s8 %v616_v39  ;;  %s1053_s27 = scalar_lea.vmem %s1052_s24, 256 }
  0x34   : > { %942 = vmatpush3.bf16.xpose.msk.msra.mxu1 %vm1259_vm1, %v940_v43  ;;  %897 = vmatprep.subr.msk.bf16.mxu0 %vm1259_vm1, %v895_v44  ;;  %v970_v37 = vpack.c.bf16 %v247_v35, %v246_v34  ;;  %v619_v43 = vshrl.u32 %v618_v40, 7  ;;  %p1055_p5 = scmp.lt.s32.totalorder %s1053_s27, %s1047_s20 }
  0x35   : > { %945 = vmatprep.subr.msk.bf16.mxu1 %vm1259_vm1, %v943_v45 }
  0x36   : > { %v620_v49 = vsub.s32 %v617_v42, %v619_v43  ;;  %p1056_p6 = por %p1055_p5, %p1054_p4 }
  0x38   : > { %p1057_p7 = pnand %p1056_p6, %p1050_p2 }
  0x3b   : > { %900 = vmatpush3.bf16.xpose.msk.msra.mxu0 %vm1259_vm1, %v898_v54 }
  0x3c   : > { %948 = vmatpush3.bf16.xpose.msk.msra.mxu1 %vm1259_vm1, %v946_v55  ;;  %903 = vmatprep.subr.msk.bf16.mxu0 %vm1259_vm1, %v901_v56 }
  0x3d   : > { %951 = vmatprep.subr.msk.bf16.mxu1 %vm1259_vm1, %v949_v57 }
  0x43   : > { %906 = vmatpush3.bf16.xpose.msk.msra.mxu0 %vm1259_vm1, %v904_v4 }
  0x44   : > { %954 = vmatpush3.bf16.xpose.msk.msra.mxu1 %vm1259_vm1, %v952_v5  ;;  %909 = vmatprep.subr.msk.bf16.mxu0 %vm1259_vm1, %v907_v6 }
  0x45   : > { %957 = vmatprep.subr.msk.bf16.mxu1 %vm1259_vm1, %v955_v7 }
  0x4b   : > { %912 = vmatpush3.bf16.xpose.msk.msra.mxu0 %vm1259_vm1, %v910_v16 }
  0x4c   : > { %960 = vmatpush3.bf16.xpose.msk.msra.mxu1 %vm1259_vm1, %v958_v17  ;;  %915 = vmatprep.subr.msk.bf16.mxu0 %vm1259_vm1, %v913_v18 }
  0x4d   : > { %963 = vmatprep.subr.msk.bf16.mxu1 %vm1259_vm1, %v961_v19 }
  0x53   : > { %918 = vmatpush3.bf16.xpose.msk.msra.mxu0 %vm1259_vm1, %v916_v28 }
  0x54   : > { %966 = vmatpush3.bf16.xpose.msk.msra.mxu1 %vm1259_vm1, %v964_v29  ;;  %921 = vmatprep.subr.msk.bf16.mxu0 %vm1259_vm1, %v919_v30 }
  0x55   : > { %969 = vmatprep.subr.msk.bf16.mxu1 %vm1259_vm1, %v967_v31 }
  0x5b   : > { %924 = vmatpush3.bf16.xpose.msk.msra.mxu0 %vm1259_vm1, %v922_v36 }
  0x5c   : > { %972 = vmatpush3.bf16.xpose.msk.msra.mxu1 %vm1259_vm1, %v970_v37 }
  0x62   : > { %842 = vmatmul.mubr.msk.f32.vlgmr.msra.gmra.mrb[0].mxu0 %vm271_vm0, %v1242_v0 }
  0x63   : > { %876 = vmatmul.mubr.msk.f32.vlgmr.msra.gmra.mrb[0].mxu1 %vm271_vm0, %v1242_v0 }
  0x93   : > { %v269_v41 = vpop.permute.xlu0 %268 }
 0x135   : > { %v533_v44 = vpop.f32.mrb[0].mxu0 }
 0x136   : > { %v534_v45 = vadd.f32 %v533_v44, %v269_v41  ;;  %v604_v3 = vpop.f32.mrb[0].mxu1  ;;  %v535_v46 = vpop.f32.mrb[1].mxu0 }
 0x137   : > { %v605_v47 = vadd.f32 %v604_v3, %v269_v41  ;;  %v536_v48 = vadd.f32 %v535_v46, %v269_v41  ;;  %v606_v50 = vpop.f32.mrb[1].mxu1 }
 0x138   : > { %v607_v51 = vadd.f32 %v606_v50, %v269_v41 }
 0x139   : > { %v613_v0 = vcombine.low %v534_v45, %v536_v48 }
 0x13a   : > { %v614_v52 = vcombine.low %v605_v47, %v607_v51 }
 0x13b   : > { %v621_v53 = vrot.slane %v613_v0, %v620_v49 }
 0x13c   : > { %v628_v54 = vrot.slane %v614_v52, %v620_v49 }
 0x13e   : > { %v629_v55 = vcombine.low %v621_v53, %v628_v54 }
 0x140   : > { %631 = vst [vmem:[%s188_s8] sm:$0xff] %v629_v55 }
 0x141   : > { %1060 = shalt.err (!%p1057_p7)
}
 0x142   : > { %s1061_s28 = scalar_lea.hbm %s1401_s10, 128  ;;  %s1065_s5 = scalar_lea.hbm %s1457_s3, 512 }
 0x143   : > { %p1062_p9 = scmp.ne.s32.totalorder %s1401_s10, %s1061_s28  ;;  %p1066_p12 = scmp.lt.u32.totalorder %s1401_s10, %s1457_s3 }
 0x144   : > { %p1067_p13 = scmp.lt.u32.totalorder %s1065_s5, %s1061_s28  ;;  %p1069_p1 = scmp.lt.u32.totalorder %s1061_s28, %s1401_s10 }
 0x145   : > { %p1063_p10 = pnand %p1062_p9, %p1217_p3 }
 0x146   : > { %p1068_p0 = por %p1067_p13, %p1066_p12 }
 0x147   : > { %p1064_p11 = pneg %p1063_p10 }
 0x148   : > { %p1070_p2 = por %p1069_p1, %p1068_p0 }
 0x14a   : > { %p1071_p4 = pnand %p1070_p2, %p1064_p11 }
 0x14c   : > { %1074 = shalt.err (!%p1071_p4)
}
 0x14d   : > { %973 = dma.vmem_to_hbm [thread:$0]  (%p1217_p3), %s1403_s9, 128, %s1401_s10, %s633_s11  }
 0x14e PF: > { %p979_p5 = scmp.ge.s32.totalorder %s1141_s19, 2  ;;  %s661_s8 = sand.u32 1, %s1113_s12  }
 0x14f   : > { %s662_s15 = scalar_lea.sflag [#allocation3], %s661_s8 }
 0x150   : > { %p976_p6 = pnand %p979_p5, %p1226_p8 }
 0x152   : > { %1108 = dma.done.wait (!%p976_p6), %s662_s15, 128  }
 0x153   : > { %1110 = vsyncadd (!%p976_p6), %s662_s15, 4294967168  ;;  %s16_s19 = sadd.s32 1, %s1141_s19   ;;  %s1462_s12 = smov %s1117_s13 }
 0x154   : > { %p13_p7 = scmp.ge.s32.totalorder %s16_s19, 6   ;;  %s1463_s13 = smov %s1121_s14 }
 0x155   : > { %s1464_s14 = smov %s1235_s30  ;;  %s1465_s15 = smov %s1133_s17 }
 0x156   : > { %s1466_s16 = smov %s1137_s18  ;;  %s1467_s17 = smov %s1470_s22 }
 0x157   : > { %s1468_s18 = smov %s1474_s23  ;;  %15 = sbr.rel (!%p13_p7) target bundleno = 5 (0x5), region = 67 }
 0x15e   :  { %667 = vsyncpa [#allocation3], 1 }
 0x15f   :  { %669 = vsyncpa [#allocation3 + $0x1], 1 }

</bundles_post_ra>
